<compile_context>
chip_gen: v6e
topology: v6e:2x2x1
jax: 0.10.0
libtpu: 0.0.40
codegen_flags: <defaults>
</compile_context>

<pallas_src>
import numpy as np

import jax
import jax.numpy as jnp
from jax.experimental import pallas as pl
from jax.experimental.pallas import tpu as pltpu


def _round_up(v, m):
    return -(-v // m) * m


def _cdiv(a, b):
    return -(-a // b)


# ---------------------------------------------------------------------------
# Kernel: one grid step = TR flat rows x 128 channels of the flat (N, C) array.
# ---------------------------------------------------------------------------
def _ppeg_kernel(x_ref, halo_ref, m_ref, wb_ref, o_ref, win_ref):
    """
    x_ref   : (TR, CB)    rows [k*TR, (k+1)*TR) of the 4-row-top-padded input
    halo_ref: (8,  CB)    rows [(k+1)*TR, (k+1)*TR + 8) of the same array
    m_ref   : (TR, 7)     per-row tap-validity masks (col 3 doubles as is_body)
    wb_ref  : (8,  CB)    rows 0..6 = folded k=7 depthwise taps, row 7 = fused bias
    o_ref   : (TR, CB)
    win_ref : (TR+8, CB)  VMEM scratch: block + bottom halo, assembled once
    """
    tr = o_ref.shape[0]
    # Assemble the stencil window once (sublane-aligned sub-stores), then load
    # it once; every tap below is an in-register shifted view of that single
    # value, so there are no misaligned ref reads / per-tap VMEM slice copies.
    win_ref[0:tr, :] = x_ref[...]
    win_ref[tr:tr + 8, :] = halo_ref[...]
    win = win_ref[...]                                   # (TR+8, CB)

    m = m_ref[...]                                       # (TR, 7)
    wb = wb_ref[...]                                     # (8, CB)

    # Centre row of the window == the input row itself: residual for patch
    # rows, plain passthrough for class-token rows (whose masks are all zero).
    centre = win[4:4 + tr, :]
    acc = centre + m[:, 3:4] * wb[7:8, :]                # masked fused bias
    for j in range(7):                                   # 7 folded taps
        tap = win[j + 1:j + 1 + tr, :]                   # flat row r + (j - 3)
        acc = acc + (m[:, j:j + 1] * wb[j:j + 1, :]) * tap
    o_ref[...] = acc


# ---------------------------------------------------------------------------
# Host-side helpers (depend only on the static `lengths`).
# ---------------------------------------------------------------------------
def _build_row_masks(lengths, rows_padded):
    """(rows_padded, 7) f32: col j == 1 iff the row is a patch-token row AND the
    k=7 stencil tap at offset (j - 3) stays inside the same bag's patch tokens."""
    n = int(sum(lengths))
    pos = np.full((n,), -1, dtype=np.int64)      # patch position, -1 = class token
    blen = np.zeros((n,), dtype=np.int64)
    off = 0
    for seg_len in lengths:
        bl = int(seg_len) - 1
        if bl > 0:
            pos[off + 1: off + 1 + bl] = np.arange(bl)
            blen[off + 1: off + 1 + bl] = bl
        off += int(seg_len)
    t = np.arange(7) - 3
    src = pos[:, None] + t[None, :]
    valid = (pos[:, None] >= 0) & (src >= 0) & (src < blen[:, None])
    m = np.zeros((rows_padded, 7), dtype=np.float32)
    m[:n] = valid.astype(np.float32)
    return m


# ---------------------------------------------------------------------------
# Full forward.
# ---------------------------------------------------------------------------
def ppeg_forward(x, lengths, params, *, row_block=None):
    """PPEG forward on the flat (N, C) activation. `lengths` is a static tuple.

    TODO(synk): a scalar-prefetch (per-segment offset table) variant would also
    remove the static-`lengths` retrace requirement.
    """
    w3, b3, w5, b5, w7, b7 = params
    n, c = x.shape
    assert n == int(sum(lengths))

    # ---- fold k3/k5/k7 depthwise convs into one k=7 stencil + fused bias ----
    w_fold = w7.astype(jnp.float32)
    w_fold = w_fold.at[1:6, :].add(w5)
    w_fold = w_fold.at[2:5, :].add(w3)
    b_eff = (b3 + b5 + b7).astype(jnp.float32)           # (1, C)

    # ---- lane-dense channel chunking (128 lanes per grid step) ----
    cb = 128
    cp = _round_up(c, cb)
    n_cchunks = cp // cb
    # TODO(synk): for C that neither divides nor is divided by 128, pack the
    # narrow remainder instead of zero-padding the whole last chunk.

    # ---- generation-aware row-block sizing ----
    try:
        vmem_cap = int(pltpu.get_tpu_info().vmem_capacity_bytes)
    except Exception:
        vmem_cap = 64 << 20
    tgt = (4 << 20) if vmem_cap >= (96 << 20) else (2 << 20)   # bytes per buffer
    if row_block is None:
        tr = max(8, ((tgt // (cb * 4)) // 8) * 8)
        tr = min(tr, _round_up(n, 8))
        # keep the total grid >= 2 steps so both v7x TensorCores get work
        if n > 8 and n_cchunks * _cdiv(n, tr) < 2:
            tr = min(tr, _round_up(_cdiv(n, 2), 8))
    else:
        tr = min(_round_up(max(int(row_block), 8), 8), _round_up(n, 8))
    g = _cdiv(n, tr)
    np_rows = g * tr
    rows_in = np_rows + 8          # 4 zero rows on top + data + zero tail/halo
    vmem_limit = int(min(vmem_cap, 128 << 20)) * 3 // 4

    # ---- O(1) glue: pad once in, slice once out ----
    xp = jnp.pad(x.astype(jnp.float32),
                 ((4, rows_in - 4 - n), (0, cp - c)))           # (rows_in, cp)
    masks = jnp.asarray(_build_row_masks(lengths, np_rows))     # (np_rows, 7)
    wb = jnp.concatenate([w_fold, b_eff], axis=0)               # (8, C)
    if cp > c:
        wb = jnp.pad(wb, ((0, 0), (0, cp - c)))

    tr_blocks = tr // 8
    out = pl.pallas_call(
        _ppeg_kernel,
        out_shape=jax.ShapeDtypeStruct((np_rows, cp), jnp.float32),
        grid=(g, n_cchunks),
        in_specs=[
            pl.BlockSpec((tr, cb), lambda k, ci: (k, ci)),                  # row block
            pl.BlockSpec((8, cb), lambda k, ci: ((k + 1) * tr_blocks, ci)),  # halo slab
            pl.BlockSpec((tr, 7), lambda k, ci: (k, 0)),                    # tap masks
            pl.BlockSpec((8, cb), lambda k, ci: (0, ci)),                   # taps + bias
        ],
        out_specs=pl.BlockSpec((tr, cb), lambda k, ci: (k, ci)),
        scratch_shapes=[pltpu.VMEM((tr + 8, cb), jnp.float32)],
        compiler_params=pltpu.CompilerParams(
            dimension_semantics=("parallel", "parallel"),
            vmem_limit_bytes=vmem_limit),
    )(xp, xp, masks, wb)

    return out[:n, :c]


# ---------------------------------------------------------------------------
# Pure-JAX reference mirroring PyTorch Conv1d(groups=C, padding='same').
# ---------------------------------------------------------------------------
def ppeg_reference(x, lengths, params):
    w3, b3, w5, b5, w7, b7 = params
    offsets = np.concatenate([[0], np.cumsum(np.asarray(lengths))])[:-1]

    def dw(body, w, b):
        k = w.shape[0]
        pad = (k - 1) // 2
        xp = jnp.pad(body, ((pad, pad), (0, 0)))
        out = jnp.zeros_like(body) + b
        for j in range(k):
            out = out + xp[j:j + body.shape[0]] * w[j]
        return out

    outs = []
    for off, seg_len in zip(offsets, lengths):
        seg = x[int(off):int(off) + int(seg_len)]
        cls, body = seg[0:1], seg[1:]
        y = body + dw(body, w3, b3) + dw(body, w5, b5) + dw(body, w7, b7)
        outs.append(jnp.concatenate([cls, y], axis=0))
    return jnp.concatenate(outs, axis=0)


def init_params(key, in_features):
    """Synthetic weights. Depthwise Conv1d weight (C,1,k) stored as (k,C)."""
    ks = jax.random.split(key, 6)

    def w(k, subkey):
        return 0.1 * jax.random.normal(subkey, (k, in_features), jnp.float32)

    def b(subkey):
        return 0.1 * jax.random.normal(subkey, (1, in_features), jnp.float32)

    return (w(3, ks[0]), b(ks[1]), w(5, ks[2]), b(ks[3]), w(7, ks[4]), b(ks[5]))


if __name__ == "__main__":
    in_features = 128
    lengths = (37, 29, 23, 19)       # each bag: 1 class token + (L-1) patch tokens
    n_total = sum(lengths)

    key = jax.random.PRNGKey(0)
    kx, kp = jax.random.split(key)
    x = jax.random.normal(kx, (n_total, in_features), jnp.float32)
    params = init_params(kp, in_features)

    ref = ppeg_reference(x, lengths, params)

    # Default (generation-aware) block sizing.
    out = jax.block_until_ready(ppeg_forward(x, lengths, params))
    assert out.shape == (n_total, in_features)
    np.testing.assert_allclose(np.asarray(out), np.asarray(ref),
                               rtol=1e-5, atol=1e-5)

    # Small explicit row blocks: exercises the multi-block halo path.
    out_small = jax.block_until_ready(
        ppeg_forward(x, lengths, params, row_block=32))
    np.testing.assert_allclose(np.asarray(out_small), np.asarray(ref),
                               rtol=1e-5, atol=1e-5)

    print("KERNEL_OK")
</pallas_src>

<mosaic_0001>
module attributes {stable_mosaic.version = 11 : i64} {
  func.func @_ppeg_kernel(%arg0: i32, %arg1: i32, %arg2: memref<56x128xf32, #tpu.memory_space<vmem>>, %arg3: memref<8x128xf32, #tpu.memory_space<vmem>>, %arg4: memref<56x7xf32, #tpu.memory_space<vmem>>, %arg5: memref<8x128xf32, #tpu.memory_space<vmem>>, %arg6: memref<56x128xf32, #tpu.memory_space<vmem>>, %arg7: memref<64x128xf32, #tpu.memory_space<vmem>>) attributes {dimension_semantics = [#tpu.dimension_semantics<parallel>, #tpu.dimension_semantics<parallel>], iteration_bounds = array<i64: 2, 1>, scalar_prefetch = 0 : i64, scratch_operands = 1 : i64, tpu.core_type = #tpu.core_type<tc>, window_params = [{transform_indices = @transform_0, window_bounds = array<i64: 56, 128>}, {transform_indices = @transform_1, window_bounds = array<i64: 8, 128>}, {transform_indices = @transform_2, window_bounds = array<i64: 56, 7>}, {transform_indices = @transform_3, window_bounds = array<i64: 8, 128>}, {transform_indices = @transform_4, window_bounds = array<i64: 56, 128>}]} {
    %c0 = arith.constant 0 : index
    %c0_0 = arith.constant 0 : index
    %0 = vector.load %arg2[%c0, %c0_0] : memref<56x128xf32, #tpu.memory_space<vmem>>, vector<56x128xf32>
    %c0_1 = arith.constant 0 : index
    %c0_2 = arith.constant 0 : index
    %1 = vector.load %arg7[%c0_1, %c0_2] : memref<64x128xf32, #tpu.memory_space<vmem>>, vector<56x128xf32>
    tpu.vector_store %arg7[%c0_1, %c0_2], %0 {strides = array<i32>} : memref<64x128xf32, #tpu.memory_space<vmem>>, vector<56x128xf32>,
    %c0_3 = arith.constant 0 : index
    %c0_4 = arith.constant 0 : index
    %2 = vector.load %arg3[%c0_3, %c0_4] : memref<8x128xf32, #tpu.memory_space<vmem>>, vector<8x128xf32>
    %c56 = arith.constant 56 : index
    %c0_5 = arith.constant 0 : index
    %3 = vector.load %arg7[%c56, %c0_5] : memref<64x128xf32, #tpu.memory_space<vmem>>, vector<8x128xf32>
    tpu.vector_store %arg7[%c56, %c0_5], %2 {strides = array<i32>} : memref<64x128xf32, #tpu.memory_space<vmem>>, vector<8x128xf32>,
    %c0_6 = arith.constant 0 : index
    %c0_7 = arith.constant 0 : index
    %4 = vector.load %arg7[%c0_6, %c0_7] : memref<64x128xf32, #tpu.memory_space<vmem>>, vector<64x128xf32>
    %c0_8 = arith.constant 0 : index
    %c0_9 = arith.constant 0 : index
    %5 = vector.load %arg4[%c0_8, %c0_9] : memref<56x7xf32, #tpu.memory_space<vmem>>, vector<56x7xf32>
    %c0_10 = arith.constant 0 : index
    %c0_11 = arith.constant 0 : index
    %6 = vector.load %arg5[%c0_10, %c0_11] : memref<8x128xf32, #tpu.memory_space<vmem>>, vector<8x128xf32>
    %7 = vector.extract_strided_slice %4 {offsets = [4, 0], sizes = [56, 128], strides = [1, 1]} : vector<64x128xf32> to vector<56x128xf32>
    %8 = vector.extract_strided_slice %5 {offsets = [0, 3], sizes = [56, 1], strides = [1, 1]} : vector<56x7xf32> to vector<56x1xf32>
    %9 = vector.extract_strided_slice %6 {offsets = [7, 0], sizes = [1, 128], strides = [1, 1]} : vector<8x128xf32> to vector<1x128xf32>
    %10 = vector.broadcast %8 : vector<56x1xf32> to vector<56x128xf32>
    %11 = vector.broadcast %9 : vector<1x128xf32> to vector<56x128xf32>
    %12 = arith.mulf %10, %11 : vector<56x128xf32>
    %13 = arith.addf %7, %12 : vector<56x128xf32>
    %14 = vector.extract_strided_slice %4 {offsets = [1, 0], sizes = [56, 128], strides = [1, 1]} : vector<64x128xf32> to vector<56x128xf32>
    %15 = vector.extract_strided_slice %5 {offsets = [0, 0], sizes = [56, 1], strides = [1, 1]} : vector<56x7xf32> to vector<56x1xf32>
    %16 = vector.extract_strided_slice %6 {offsets = [0, 0], sizes = [1, 128], strides = [1, 1]} : vector<8x128xf32> to vector<1x128xf32>
    %17 = vector.broadcast %15 : vector<56x1xf32> to vector<56x128xf32>
    %18 = vector.broadcast %16 : vector<1x128xf32> to vector<56x128xf32>
    %19 = arith.mulf %17, %18 : vector<56x128xf32>
    %20 = arith.mulf %19, %14 : vector<56x128xf32>
    %21 = arith.addf %13, %20 : vector<56x128xf32>
    %22 = vector.extract_strided_slice %4 {offsets = [2, 0], sizes = [56, 128], strides = [1, 1]} : vector<64x128xf32> to vector<56x128xf32>
    %23 = vector.extract_strided_slice %5 {offsets = [0, 1], sizes = [56, 1], strides = [1, 1]} : vector<56x7xf32> to vector<56x1xf32>
    %24 = vector.extract_strided_slice %6 {offsets = [1, 0], sizes = [1, 128], strides = [1, 1]} : vector<8x128xf32> to vector<1x128xf32>
    %25 = vector.broadcast %23 : vector<56x1xf32> to vector<56x128xf32>
    %26 = vector.broadcast %24 : vector<1x128xf32> to vector<56x128xf32>
    %27 = arith.mulf %25, %26 : vector<56x128xf32>
    %28 = arith.mulf %27, %22 : vector<56x128xf32>
    %29 = arith.addf %21, %28 : vector<56x128xf32>
    %30 = vector.extract_strided_slice %4 {offsets = [3, 0], sizes = [56, 128], strides = [1, 1]} : vector<64x128xf32> to vector<56x128xf32>
    %31 = vector.extract_strided_slice %5 {offsets = [0, 2], sizes = [56, 1], strides = [1, 1]} : vector<56x7xf32> to vector<56x1xf32>
    %32 = vector.extract_strided_slice %6 {offsets = [2, 0], sizes = [1, 128], strides = [1, 1]} : vector<8x128xf32> to vector<1x128xf32>
    %33 = vector.broadcast %31 : vector<56x1xf32> to vector<56x128xf32>
    %34 = vector.broadcast %32 : vector<1x128xf32> to vector<56x128xf32>
    %35 = arith.mulf %33, %34 : vector<56x128xf32>
    %36 = arith.mulf %35, %30 : vector<56x128xf32>
    %37 = arith.addf %29, %36 : vector<56x128xf32>
    %38 = vector.extract_strided_slice %4 {offsets = [4, 0], sizes = [56, 128], strides = [1, 1]} : vector<64x128xf32> to vector<56x128xf32>
    %39 = vector.extract_strided_slice %5 {offsets = [0, 3], sizes = [56, 1], strides = [1, 1]} : vector<56x7xf32> to vector<56x1xf32>
    %40 = vector.extract_strided_slice %6 {offsets = [3, 0], sizes = [1, 128], strides = [1, 1]} : vector<8x128xf32> to vector<1x128xf32>
    %41 = vector.broadcast %39 : vector<56x1xf32> to vector<56x128xf32>
    %42 = vector.broadcast %40 : vector<1x128xf32> to vector<56x128xf32>
    %43 = arith.mulf %41, %42 : vector<56x128xf32>
    %44 = arith.mulf %43, %38 : vector<56x128xf32>
    %45 = arith.addf %37, %44 : vector<56x128xf32>
    %46 = vector.extract_strided_slice %4 {offsets = [5, 0], sizes = [56, 128], strides = [1, 1]} : vector<64x128xf32> to vector<56x128xf32>
    %47 = vector.extract_strided_slice %5 {offsets = [0, 4], sizes = [56, 1], strides = [1, 1]} : vector<56x7xf32> to vector<56x1xf32>
    %48 = vector.extract_strided_slice %6 {offsets = [4, 0], sizes = [1, 128], strides = [1, 1]} : vector<8x128xf32> to vector<1x128xf32>
    %49 = vector.broadcast %47 : vector<56x1xf32> to vector<56x128xf32>
    %50 = vector.broadcast %48 : vector<1x128xf32> to vector<56x128xf32>
    %51 = arith.mulf %49, %50 : vector<56x128xf32>
    %52 = arith.mulf %51, %46 : vector<56x128xf32>
    %53 = arith.addf %45, %52 : vector<56x128xf32>
    %54 = vector.extract_strided_slice %4 {offsets = [6, 0], sizes = [56, 128], strides = [1, 1]} : vector<64x128xf32> to vector<56x128xf32>
    %55 = vector.extract_strided_slice %5 {offsets = [0, 5], sizes = [56, 1], strides = [1, 1]} : vector<56x7xf32> to vector<56x1xf32>
    %56 = vector.extract_strided_slice %6 {offsets = [5, 0], sizes = [1, 128], strides = [1, 1]} : vector<8x128xf32> to vector<1x128xf32>
    %57 = vector.broadcast %55 : vector<56x1xf32> to vector<56x128xf32>
    %58 = vector.broadcast %56 : vector<1x128xf32> to vector<56x128xf32>
    %59 = arith.mulf %57, %58 : vector<56x128xf32>
    %60 = arith.mulf %59, %54 : vector<56x128xf32>
    %61 = arith.addf %53, %60 : vector<56x128xf32>
    %62 = vector.extract_strided_slice %4 {offsets = [7, 0], sizes = [56, 128], strides = [1, 1]} : vector<64x128xf32> to vector<56x128xf32>
    %63 = vector.extract_strided_slice %5 {offsets = [0, 6], sizes = [56, 1], strides = [1, 1]} : vector<56x7xf32> to vector<56x1xf32>
    %64 = vector.extract_strided_slice %6 {offsets = [6, 0], sizes = [1, 128], strides = [1, 1]} : vector<8x128xf32> to vector<1x128xf32>
    %65 = vector.broadcast %63 : vector<56x1xf32> to vector<56x128xf32>
    %66 = vector.broadcast %64 : vector<1x128xf32> to vector<56x128xf32>
    %67 = arith.mulf %65, %66 : vector<56x128xf32>
    %68 = arith.mulf %67, %62 : vector<56x128xf32>
    %69 = arith.addf %61, %68 : vector<56x128xf32>
    %c0_12 = arith.constant 0 : index
    %c0_13 = arith.constant 0 : index
    %70 = vector.load %arg6[%c0_12, %c0_13] : memref<56x128xf32, #tpu.memory_space<vmem>>, vector<56x128xf32>
    tpu.vector_store %arg6[%c0_12, %c0_13], %69 {strides = array<i32>} : memref<56x128xf32, #tpu.memory_space<vmem>>, vector<56x128xf32>,
    return
  }
  func.func @transform_0(%arg0: i32, %arg1: i32) -> (i32, i32) {
    %c0_i32 = arith.constant 0 : i32
    return %arg0, %arg1 : i32, i32
  }
  func.func @transform_1(%arg0: i32, %arg1: i32) -> (i32, i32) {
    %c1_i32 = arith.constant 1 : i32
    %0 = arith.addi %arg0, %c1_i32 : i32
    %c7_i32 = arith.constant 7 : i32
    %1 = arith.muli %0, %c7_i32 : i32
    %c0_i32 = arith.constant 0 : i32
    return %1, %arg1 : i32, i32
  }
  func.func @transform_2(%arg0: i32, %arg1: i32) -> (i32, i32) {
    %c0_i32 = arith.constant 0 : i32
    %c0_i32_0 = arith.constant 0 : i32
    return %arg0, %c0_i32 : i32, i32
  }
  func.func @transform_3(%arg0: i32, %arg1: i32) -> (i32, i32) {
    %c0_i32 = arith.constant 0 : i32
    %c0_i32_0 = arith.constant 0 : i32
    return %c0_i32, %arg1 : i32, i32
  }
  func.func @transform_4(%arg0: i32, %arg1: i32) -> (i32, i32) {
    %c0_i32 = arith.constant 0 : i32
    return %arg0, %arg1 : i32, i32
  }
}

</mosaic_0001>

<bundles_post_ra>
// kernel: tpu_custom_call.1
= control target key start
LH: loop header
LB: loop body
LE: loop exit
PB: predicated region body
PF: predicated region fallthrough
CT: control target
= control target key end

     0   :  { %s2309_s0 = inlined_call_operand.vmem [shape: f32[120,128], index: 0, kind: input, shape index: {}]   ;;  %s2310_s1 = inlined_call_operand.hbm [shape: f32[120,128], index: 1, kind: input, shape index: {}]   ;;  %s2311_s2 = inlined_call_operand.vmem [shape: f32[112,7], index: 2, kind: input, shape index: {}]   ;;  %s2312_s3 = inlined_call_operand.hbm [shape: f32[8,128], index: 3, kind: input, shape index: {}]   ;;  %s2313_s4 = inlined_call_operand.hbm [shape: f32[112,128], index: 4, kind: output, shape index: {}]  }
   0x1   :  { %2319 = sst [smem:[#allocation15_spill]] %s2312_s3 }
   0x2   :  { %9 = vsyncpa [#allocation4], 0 }
   0x3   :  { %11 = vsyncpa [#allocation4 + $0x1], 0 }
   0x4   :  { %12 = vsyncpa [#allocation7], 0 }
   0x5   :  { %13 = vsyncpa [#allocation5], 0 }
   0x6   :  { %15 = vsyncpa [#allocation5 + $0x1], 0  ;;  %s1650_s15 = smov 0   ;;  %s1652_s16 = smov 0  }
   0x7   :  { %s1654_s17 = smov 0   ;;  %s1656_s18 = smov 0  }
   0x8   :  { %s1658_s19 = smov 0   ;;  %s1660_s20 = smov 0  }
   0x9   :  { %s1662_s21 = smov 0   ;;  %s1664_s22 = smov 0  }
   0xa   :  { %s1666_s23 = smov 0  }
   0xb LB: > { %2320 = sst [smem:[#allocation12_spill]] %s1579_s15  ;;  %s1311_s24 = sadd.s32 4294967295, %s1611_s23   ;;  %s1611_s23 = sphi %s1666_s23, %s21_s23   ;;  %s1607_s22 = sphi %s1664_s22, %s2343_s22   ;;  %s1603_s21 = sphi %s1662_s21, %s2342_s21   ;;  %s1599_s20 = sphi %s1660_s20, %s2341_s20   ;;  %s1595_s19 = sphi %s1658_s19, %s2340_s19   ;;  %s1591_s18 = sphi %s1656_s18, %s2339_s18   ;;  %s1587_s17 = sphi %s1654_s17, %s2338_s17   ;;  %s1583_s16 = sphi %s1652_s16, %s2337_s16   ;;  %s1579_s15 = sphi %s1650_s15, %s2336_s15  }
   0xc   : > { %s1312_s25 = sadd.s32 4294967294, %s1611_s23   ;;  %p87_p0 = scmp.ne.s32.totalorder %s1595_s19, %s1591_s18 }
   0xd   : > { %p1696_p1 = scmp.eq.s32.totalorder %s1311_s24, 0  ;;  %p164_p2 = scmp.ne.s32.totalorder %s1587_s17, %s1583_s16 }
   0xe   : > { %p165_p3 = scmp.eq.s32.totalorder %s1311_s24, 1  ;;  %p170_p5 = scmp.ne.s32.totalorder %s1583_s16, %s1579_s15 }
   0xf   : > { %p1704_p4 = por %p1696_p1, %p87_p0  ;;  %p171_p7 = scmp.eq.s32.totalorder %s1312_s25, 1 }
  0x10   : > { %p1710_p6 = por %p165_p3, %p164_p2  ;;  %p1313_p8 = scmp.ge.s32.totalorder %s1611_s23, 1 }
  0x11   : > { %s2322_s27 = scalar_select %p1704_p4, 1, 0 }
  0x12   : > { %s2323_s28 = scalar_select %p1710_p6, 1, 0 }
  0x13   : > { %p178_p9 = scmp.lt.s32.totalorder %s1611_s23, 3  ;;  %p1716_p10 = por %p171_p7, %p170_p5 }
  0x14   : > { %s1613_s5 = smov [#allocation6]   ;;  %p1315_p12 = scmp.ge.s32.totalorder %s1611_s23, 2 }
  0x15   : > { %s2324_s29 = scalar_select %p1716_p10, 1, 0 }
  0x16   : > { %p1720_p11 = pnand %p1313_p8, %p178_p9  ;;  %s193_s6 = sshll.u32 %s1613_s5, 4  ;;  %s194_s6 = int_to_ptr.vmem [resolvable:$true] %s193_s6 }
  0x17   : > { %2325 = sst [smem:[#allocation13_spill]] %s2324_s29  ;;  %s33_s7 = sadd.s32 1, %s1607_s22 }
  0x18   : > { %p1336_p13 = pneg %p1720_p11  ;;  %p35_p2 = scmp.ge.s32.totalorder %s33_s7, 2 }
  0x19   : > { %s1459_s8 = scalar_lea.vmem %s194_s6, 128  ;;  %p1467_p8 = scmp.lt.s32.totalorder %s194_s6, %s194_s6 }
  0x1a   : > { %p1337_p0 = pnand %p1336_p13, %p1696_p1  ;;  %p1460_p5 = scmp.ne.s32.totalorder %s194_s6, %s1459_s8 }
  0x1b   : > { %p1468_p9 = scmp.lt.s32.totalorder %s1459_s8, %s1459_s8 }
  0x1c   : > { %p1450_p3 = pneg %p1337_p0 }
  0x1d   : > { %p1469_p6 = por %p1468_p9, %p1467_p8 }
  0x1e   : > { %p1462_p7 = pnand %p1460_p5, %p1450_p3 }
  0x20   : > { %p1463_p10 = pneg %p1462_p7 }
  0x22   : > { %p1470_p4 = pnand %p1469_p6, %p1463_p10 }
  0x24   : > { %1473 = shalt.err (!%p1470_p4)
}
  0x25   : > { %s2327_s3 = sld [smem:[#allocation15_spill]]  ;;  %s66_s12 = smul.u32 7, %s33_s7 }
  0x26   : > { %s1733_s11 = scalar_select %p35_p2, 0, %s33_s7  }
  0x27   : > { %s74_s13 = sadd.s32 1, %s1599_s20  ;;  %p81_p4 = scmp.ne.s32.totalorder %s1599_s20, %s1595_s19 }
  0x28   : > { %2328 = sst [smem:[#allocation14_spill]] %s1733_s11  ;;  %s67_s14 = sadd.s32 1, %s1733_s11 }
  0x29   : > { %s68_s18 = smul.u32 7, %s67_s14  ;;  %p82_p6 = scmp.eq.s32.totalorder %s1611_s23, 0 }
  0x2a   : > { %s149_s24 = ssub.s32 %s1607_s22, %s1733_s11  ;;  %s154_s25 = sadd.s32 1, %s1587_s17 }
  0x2b   : > { %1339 = dma.hbm_to_vmem [thread:$0]  (!%p1337_p0), %s2327_s3, 128, %s194_s6, [#allocation7]  }
  0x2c   : > { %s69_s5 = ssub.s32 %s66_s12, %s68_s18  ;;  %p83_p10 = por %p82_p6, %p81_p4 }
  0x2d   : > { %p72_p13 = scmp.eq.s32.totalorder %s69_s5, 0  ;;  %p152_p3 = scmp.eq.s32.totalorder %s149_s24, 0 }
  0x2e   : > { %p1349_p0 = scmp.lt.s32.totalorder %s1611_s23, 2  ;;  %s224_s6 = sand.u32 1, %s1599_s20  }
  0x2f   : > { %s1746_s8 = scalar_select %p72_p13, %s1599_s20, %s74_s13  }
  0x30   : > { %s1749_s9 = scalar_select %p152_p3, %s1587_s17, %s154_s25  }
  0x31   : > { %s1316_s10 = sshll.u32 %s224_s6, 3  ;;  %s1317_s7 = smul.u32 896, %s1607_s22 }
  0x32   : > { %s228_s3 = scalar_lea.vmem [#allocation3], %s1316_s10  ;;  %p1752_p2 = pnand %p1349_p0, %p83_p10 }
  0x33   : > { %s238_s29 = sshll.u32 %s228_s3, 4  ;;  %s1225_s12 = scalar_lea.hbm %s2310_s1, %s1317_s7  ;;  %s239_s29 = int_to_ptr.vmem [resolvable:$true] %s238_s29 }
  0x34   : > { %s1226_s18 = scalar_lea.hbm %s1225_s12, 896  ;;  %s225_s24 = scalar_lea.sflag [#allocation4], %s224_s6 }
  0x35   : > { %p1476_p5 = pneg %p1752_p2  ;;  %s1487_s13 = scalar_lea.vmem %s239_s29, 128 }
  0x36   : > { %p1488_p7 = scmp.ne.s32.totalorder %s239_s29, %s1487_s13  ;;  %s1614_s25 = smov [#allocation3]  }
  0x37   : > { %s1492_s3 = sshll.u32 %s1614_s25, 4  ;;  %s1493_s3 = int_to_ptr.vmem [resolvable:$false] %s1492_s3 }
  0x38   : > { %p1490_p8 = pnand %p1488_p7, %p1476_p5  ;;  %s1494_s5 = scalar_lea.vmem %s1493_s3, 256 }
  0x39   : > { %p1495_p4 = scmp.lt.s32.totalorder %s239_s29, %s1493_s3  ;;  %p1496_p6 = scmp.lt.s32.totalorder %s1494_s5, %s1487_s13 }
  0x3a   : > { %p1491_p9 = pneg %p1490_p8 }
  0x3b   : > { %p1497_p10 = por %p1496_p6, %p1495_p4 }
  0x3d   : > { %p1498_p13 = pnand %p1497_p10, %p1491_p9 }
  0x3f   : > { %1501 = shalt.err (!%p1498_p13)
}
  0x40   : > { %1343 = dma.hbm_to_vmem [thread:$0]  (!%p1752_p2), %s1226_s18, 128, %s239_s29, %s225_s24  }
  0x41   : > { %256 = sbr.rel (%p1720_p11) target bundleno = 339 (0x153), region = 36  ;;  %s258_s11 = sand.u32 (!%p1720_p11), 1, %s1595_s19  }
  0x42   : > { %s1766_s6 = sshll.u32 (!%p1720_p11), %s258_s11, 3  ;;  %s259_s10 = scalar_lea.sflag (!%p1720_p11), [#allocation4], %s258_s11 }
  0x43   : > { %s262_s7 = scalar_lea.vmem (!%p1720_p11), [#allocation3], %s1766_s6  ;;  %p2330_p3 = scmp.ne.s32.totalorder (!%p1720_p11), %s2322_s27, 0 }
  0x46   : > { %1566 = dma.done.wait (%p2330_p3), %s259_s10, 128  }
  0x47   : > { %1568 = vsyncadd (%p2330_p3), %s259_s10, 4294967168 }
  0x48   : > { %1570 = dma.done.wait (%p1696_p1), [#allocation7], 128  }
  0x49   : > { %1572 = vsyncadd (%p1696_p1), [#allocation7], 4294967168  ;;  %s1778_s15 = smul.u32 7, %s1603_s21  ;;  %v1615_v0 = vmov 3   ;;  %v1616_v8 = vmov 0   ;;  %v1617_v9 = vmov 1   ;;  %v401_v14 = vlaneseq }
  0x4a   : > { %1435 = vset.pattern.permute.xlu1 %v1615_v0  ;;  %1434 = vset.pattern.permute.xlu0 %v1615_v0  ;;  %v1618_v10 = vmov 2   ;;  %v1619_v11 = vmov 4   ;;  %v1620_v12 = vmov 5   ;;  %v1621_v13 = vmov 6   ;;  %v1833_v19 = vld [vmem:[#allocation6] sm:$0xff]  ;;  %v1855_v31 = vld [vmem:[%s262_s7] sm:$0xff] }
  0x4b   : > { %p328_p11 = scmp.lt.s32.totalorder %s1778_s15, 13  ;;  %p313_p1 = scmp.lt.s32.totalorder %s1778_s15, 14  ;;  %v1826_v15 = vshrl.u32 %v401_v14, 7  ;;  %vm419_vm0 = vcmask 1043456   ;;  %v796_v40 = vrot.slane %v1855_v31, 4  ;;  %vm496_vm1 = vcmask 1046528  }
  0x4c   : > { %vm601_vm2 = vcmask 1045504   ;;  %vm706_vm3 = vcmask 1044480   ;;  %vm887_vm4 = vcmask 1042432   ;;  %vm992_vm5 = vcmask 1041408   ;;  %s305_s25 = sand.u32 1, %s1583_s16   ;;  %s1326_s11 = smul.u32 896, %s1603_s21 }
  0x4d   : > { %s329_s29 = scalar_select %p328_p11, %s1778_s15, 13  ;;  %v774_v18 = vsub.s32 3, %v1826_v15  ;;  %v403_v22 = vsub.s32 7, %v1826_v15  ;;  %v479_v41 = vsub.s32 0, %v1826_v15  ;;  %vm1097_vm6 = vcmask 1040384  }
  0x4e   : > { %s2345_s15 = smov (!%p313_p1, %s1778_s15), 14  ;;  %s1327_s3 = smul.u32 56, %s305_s25 }
  0x4f   : > { %s1322_s30 = sshll.u32 %s329_s29, 3  ;;  %s1321_s26 = sshll.u32 %s2345_s15, 3  ;;  %v1848_v28 = vrot.slane %v1833_v19, %v774_v18  ;;  %v1859_v33 = vrot.slane %v1833_v19, %v403_v22  ;;  %v1880_v57 = vrot.slane %v1833_v19, %v479_v41 }
  0x50   : > { %s331_s12 = scalar_lea.vmem %s2311_s2, %s1322_s30  ;;  %s319_s13 = scalar_lea.vmem %s2309_s0, %s1321_s26 }
  0x51   : > { %v1785_v1 = vld [vmem:[%s331_s12 + $0x10] sm:$0xff]  ;;  %v1787_v2 = vld [vmem:[%s331_s12] sm:$0xff]  ;;  %v1791_v3 = vld [vmem:[%s331_s12 + $0x18] sm:$0xff]  ;;  %s2210_s5 = scalar_lea.vmem [#allocation8], %s1327_s3  ;;  %s2248_s21 = scalar_lea.hbm %s2313_s4, %s1326_s11 }
  0x52   : > { %378 = vperm.xlu1 %1435, %v1785_v1   ;;  %368 = vperm.xlu0 %1434, %v1787_v2   ;;  %v359_v4 = vld [vmem:[%s331_s12 + $0x8] sm:$0xff]  ;;  %v362_v6 = vld [vmem:[%s331_s12 + $0x20] sm:$0xff]  ;;  %v364_v7 = vld [vmem:[%s331_s12 + $0x30] sm:$0xff]  ;;  %s1186_s6 = sshll.u32 %s2210_s5, 4  ;;  %s2254_s15 = scalar_lea.sflag [#allocation5], %s305_s25  ;;  %s2243_s6 = int_to_ptr.vmem [resolvable:$true] %s1186_s6 }
  0x53   : > { %v1794_v5 = vld [vmem:[%s331_s12 + $0x28] sm:$0xff]  ;;  %v1828_v16 = vld [vmem:[%s319_s13 + $0x10] sm:$0xff]  ;;  %v1830_v17 = vld [vmem:[%s319_s13 + $0x18] sm:$0xff]  ;;  %s1503_s29 = scalar_lea.vmem %s2243_s6, 896  ;;  %p2331_p2 = scmp.ne.s32.totalorder %s2323_s28, 0 }
  0x54   : > { %v1835_v20 = vld [vmem:[%s319_s13] sm:$0xff]  ;;  %v1837_v21 = vld [vmem:[%s319_s13 + $0x8] sm:$0xff]  ;;  %v786_v23 = vrot.slane %v1828_v16, 4  ;;  %v788_v24 = vrot.slane %v1830_v17, 4  ;;  %v1851_v30 = vld [vmem:[%s319_s13 + $0x30] sm:$0xff]  ;;  %p1504_p0 = scmp.ne.s32.totalorder %s2243_s6, %s1503_s29  ;;  %s1622_s30 = smov [#allocation8]  }
  0x55   : > { %v783_v25 = vrot.slane %v1835_v20, 4  ;;  %v1843_v26 = vld [vmem:[%s319_s13 + $0x20] sm:$0xff]  ;;  %v1845_v27 = vld [vmem:[%s319_s13 + $0x28] sm:$0xff]  ;;  %v784_v29 = vrot.slane %v1837_v21, 4  ;;  %v794_v39 = vrot.slane %v1851_v30, 4  ;;  %v497_v42 = vrot.slane %v1835_v20, 1 }
  0x56   : > { %383 = vperm.xlu1 %1435, %v1791_v3   ;;  %373 = vperm.xlu0 %1434, %v359_v4   ;;  %v790_v32 = vrot.slane %v1843_v26, 4  ;;  %v789_v34 = vsel %vm419_vm0, %v786_v23, %v788_v24  ;;  %v792_v36 = vrot.slane %v1845_v27, 4  ;;  %v498_v46 = vrot.slane %v1837_v21, 1  ;;  %p1505_p5 = pnand %p1504_p0, %p2331_p2  ;;  %s1507_s14 = sshll.u32 %s1622_s30, 4  ;;  %s1508_s14 = int_to_ptr.vmem [resolvable:$false] %s1507_s14 }
  0x57   : > { %v785_v35 = vsel %vm419_vm0, %v783_v25, %v784_v29  ;;  %v787_v54 = vsel %vm419_vm0, %v784_v29, %v786_v23  ;;  %v797_v60 = vsel %vm419_vm0, %v794_v39, %v796_v40  ;;  %s1509_s27 = scalar_lea.vmem %s1508_s14, 1792  ;;  %p1510_p8 = scmp.lt.s32.totalorder %s2243_s6, %s1508_s14 }
  0x58   : > { %v791_v47 = vsel %vm419_vm0, %v788_v24, %v790_v32  ;;  %v795_v55 = vsel %vm419_vm0, %v792_v36, %v794_v39  ;;  %v793_v56 = vsel %vm419_vm0, %v790_v32, %v792_v36  ;;  %v499_v61 = vsel %vm496_vm1, %v497_v42, %v498_v46  ;;  %p1506_p7 = pneg %p1505_p5  ;;  %p1511_p9 = scmp.lt.s32.totalorder %s1509_s27, %s1503_s29 }
  0x5a   : > { %393 = vperm.xlu1 %1435, %v1794_v5   ;;  %388 = vperm.xlu0 %1434, %v362_v6   ;;  %p1512_p4 = por %p1511_p9, %p1510_p8 }
  0x5c   : > { %p1513_p6 = pnand %p1512_p4, %p1506_p7 }
  0x5e   : > { %1436 = vset.pattern.permute.xlu1 %v1616_v8  ;;  %398 = vperm.xlu0 %1434, %v364_v7  }
  0x5f   : > { %450 = vperm.xlu1 %1436, %v1787_v2  }
  0x62   : > { %1437 = vset.pattern.permute.xlu0 %v1616_v8 }
  0x63   : > { %458 = vperm.xlu1 %1436, %v1785_v1   ;;  %454 = vperm.xlu0 %1437, %v359_v4  }
  0x67   : > { %462 = vperm.xlu1 %1436, %v1791_v3   ;;  %466 = vperm.xlu0 %1437, %v362_v6  }
  0x6b   : > { %470 = vperm.xlu1 %1436, %v1794_v5   ;;  %474 = vperm.xlu0 %1437, %v364_v7  }
  0x6f   : > { %1438 = vset.pattern.permute.xlu1 %v1617_v9  ;;  %1439 = vset.pattern.permute.xlu0 %v1617_v9 }
  0x70   : > { %563 = vperm.xlu1 %1438, %v1787_v2   ;;  %567 = vperm.xlu0 %1439, %v359_v4  }
  0x74   : > { %571 = vperm.xlu1 %1438, %v1785_v1   ;;  %579 = vperm.xlu0 %1439, %v362_v6  }
  0x78   : > { %575 = vperm.xlu1 %1438, %v1791_v3   ;;  %587 = vperm.xlu0 %1439, %v364_v7  }
  0x7c   : > { %583 = vperm.xlu1 %1438, %v1794_v5   ;;  %1441 = vset.pattern.permute.xlu0 %v1618_v10 }
  0x7d   : > { %672 = vperm.xlu0 %1441, %v359_v4  }
  0x80   : > { %1440 = vset.pattern.permute.xlu1 %v1618_v10 }
  0x81   : > { %668 = vperm.xlu1 %1440, %v1787_v2   ;;  %684 = vperm.xlu0 %1441, %v362_v6  }
  0x85   : > { %676 = vperm.xlu1 %1440, %v1785_v1   ;;  %692 = vperm.xlu0 %1441, %v364_v7  }
  0x89   : > { %680 = vperm.xlu1 %1440, %v1791_v3   ;;  %1443 = vset.pattern.permute.xlu0 %v1619_v11 }
  0x8a   : > { %853 = vperm.xlu0 %1443, %v359_v4  }
  0x8d   : > { %688 = vperm.xlu1 %1440, %v1794_v5  }
  0x8e   : > { %865 = vperm.xlu0 %1443, %v362_v6  }
  0x91   : > { %1442 = vset.pattern.permute.xlu1 %v1619_v11 }
  0x92   : > { %849 = vperm.xlu1 %1442, %v1787_v2   ;;  %873 = vperm.xlu0 %1443, %v364_v7  }
  0x96   : > { %857 = vperm.xlu1 %1442, %v1785_v1   ;;  %1445 = vset.pattern.permute.xlu0 %v1620_v12 }
  0x97   : > { %958 = vperm.xlu0 %1445, %v359_v4  }
  0x9a   : > { %861 = vperm.xlu1 %1442, %v1791_v3  }
  0x9b   : > { %970 = vperm.xlu0 %1445, %v362_v6  }
  0x9e   : > { %869 = vperm.xlu1 %1442, %v1794_v5  }
  0x9f   : > { %978 = vperm.xlu0 %1445, %v364_v7  }
  0xa2   : > { %1444 = vset.pattern.permute.xlu1 %v1620_v12 }
  0xa3   : > { %954 = vperm.xlu1 %1444, %v1787_v2   ;;  %1447 = vset.pattern.permute.xlu0 %v1621_v13 }
  0xa4   : > { %1063 = vperm.xlu0 %1447, %v359_v4  }
  0xa7   : > { %962 = vperm.xlu1 %1444, %v1785_v1  }
  0xa8   : > { %1075 = vperm.xlu0 %1447, %v362_v6  }
  0xab   : > { %966 = vperm.xlu1 %1444, %v1791_v3  }
  0xac   : > { %1083 = vperm.xlu0 %1447, %v364_v7  }
  0xaf   : > { %974 = vperm.xlu1 %1444, %v1794_v5  }
  0xb3   : > { %1446 = vset.pattern.permute.xlu1 %v1621_v13 }
  0xb4   : > { %1059 = vperm.xlu1 %1446, %v1787_v2  }
  0xb8   : > { %1067 = vperm.xlu1 %1446, %v1785_v1   ;;  %v500_v1 = vrot.slane %v1828_v16, 1 }
  0xbc   : > { %1071 = vperm.xlu1 %1446, %v1791_v3  }
  0xc0   : > { %1079 = vperm.xlu1 %1446, %v1794_v5   ;;  %v502_v5 = vrot.slane %v1830_v17, 1 }
  0xcd   : > { %v379_v37 = vpop.permute.xlu1 %378  ;;  %v369_v38 = vpop.permute.xlu0 %368 }
  0xce   : > { %v778_v43 = vmul.f32 %v1848_v28, %v379_v37  ;;  %v405_v44 = vmul.f32 %v1859_v33, %v369_v38  ;;  %v776_v45 = vmul.f32 %v1848_v28, %v369_v38  ;;  %v407_v48 = vmul.f32 %v1859_v33, %v379_v37 }
  0xd0   : > { %v807_v49 = vmul.f32 %v789_v34, %v778_v43  ;;  %v420_v50 = vrot.slane %v405_v44, 4  ;;  %v1874_v51 = vmul.f32 %v785_v35, %v776_v45  ;;  %v423_v2 = vrot.slane %v407_v48, 4 }
  0xd1   : > { %v384_v52 = vpop.permute.xlu1 %383  ;;  %v374_v53 = vpop.permute.xlu0 %373 }
  0xd2   : > { %v1883_v58 = vadd.f32 %v420_v50, %v1835_v20  ;;  %v408_v59 = vmul.f32 %v1859_v33, %v384_v52  ;;  %v779_v62 = vmul.f32 %v1848_v28, %v384_v52  ;;  %v406_v63 = vmul.f32 %v1859_v33, %v374_v53 }
  0xd3   : > { %v777_v0 = vmul.f32 %v1848_v28, %v374_v53  ;;  %v822_v3 = vrot.slane %v807_v49, 4  ;;  %v819_v6 = vrot.slane %v1874_v51, 4  ;;  %v888_v51 = vrot.slane %v1835_v20, 5 }
  0xd4   : > { %v425_v4 = vrot.slane %v408_v59, 4  ;;  %v808_v7 = vmul.f32 %v791_v47, %v779_v62  ;;  %v421_v8 = vrot.slane %v406_v63, 4  ;;  %v501_v62 = vsel %vm496_vm1, %v498_v46, %v500_v1 }
  0xd5   : > { %v806_v9 = vmul.f32 %v787_v54, %v777_v0  ;;  %v394_v10 = vpop.permute.xlu1 %393  ;;  %v389_v11 = vpop.permute.xlu0 %388 }
  0xd6   : > { %v426_v12 = vsel %vm419_vm0, %v423_v2, %v425_v4  ;;  %v410_v13 = vmul.f32 %v1859_v33, %v394_v10  ;;  %v781_v14 = vmul.f32 %v1848_v28, %v394_v10  ;;  %v409_v18 = vmul.f32 %v1859_v33, %v389_v11 }
  0xd7   : > { %v1901_v22 = vadd.f32 %v426_v12, %v1830_v17  ;;  %v824_v23 = vrot.slane %v808_v7, 4  ;;  %v422_v24 = vsel %vm419_vm0, %v420_v50, %v421_v8  ;;  %v424_v25 = vsel %vm419_vm0, %v421_v8, %v423_v2 }
  0xd8   : > { %v1906_v29 = vadd.f32 %v422_v24, %v1837_v21  ;;  %v1909_v32 = vadd.f32 %v424_v25, %v1828_v16  ;;  %v820_v34 = vrot.slane %v806_v9, 4  ;;  %v429_v35 = vrot.slane %v410_v13, 4 }
  0xd9   : > { %v1912_v36 = vsel %vm419_vm0, %v822_v3, %v824_v23  ;;  %v810_v37 = vmul.f32 %v795_v55, %v781_v14  ;;  %v427_v38 = vrot.slane %v409_v18, 4  ;;  %v780_v39 = vmul.f32 %v1848_v28, %v389_v11  ;;  %v399_v40 = vpop.permute.xlu0 %398 }
  0xda   : > { %v1918_v41 = vsel %vm419_vm0, %v819_v6, %v820_v34  ;;  %v1921_v42 = vsel %vm419_vm0, %v820_v34, %v822_v3  ;;  %v1924_v43 = vmul.f32 %v1859_v33, %v399_v40  ;;  %v782_v44 = vmul.f32 %v1848_v28, %v399_v40  ;;  %v451_v45 = vpop.permute.xlu1 %450 }
  0xdb   : > { %v828_v47 = vrot.slane %v810_v37, 4  ;;  %v428_v48 = vsel %vm419_vm0, %v425_v4, %v427_v38  ;;  %v430_v49 = vsel %vm419_vm0, %v427_v38, %v429_v35  ;;  %v809_v50 = vmul.f32 %v793_v56, %v780_v39 }
  0xdc   : > { %v445_v52 = vadd.f32 %v428_v48, %v1843_v26  ;;  %v1931_v53 = vadd.f32 %v430_v49, %v1845_v27  ;;  %v431_v54 = vrot.slane %v1924_v43, 4  ;;  %v1934_v55 = vmul.f32 %v797_v60, %v782_v44 }
  0xdd   : > { %v826_v33 = vrot.slane %v809_v50, 4  ;;  %v481_v59 = vmul.f32 %v1880_v57, %v451_v45  ;;  %v503_v28 = vsel %vm496_vm1, %v500_v1, %v502_v5  ;;  %v504_v60 = vrot.slane %v1843_v26, 1 }
  0xde   : > { %v432_v56 = vsel %vm419_vm0, %v429_v35, %v431_v54  ;;  %v830_v63 = vrot.slane %v1934_v55, 4  ;;  %v459_v0 = vpop.permute.xlu1 %458  ;;  %v455_v2 = vpop.permute.xlu0 %454  ;;  %v506_v3 = vrot.slane %v1845_v27, 1  ;;  %v508_v11 = vrot.slane %v1851_v30, 1 }
  0xdf   : > { %v1948_v4 = vsel %vm419_vm0, %v824_v23, %v826_v33  ;;  %v1951_v7 = vsel %vm419_vm0, %v826_v33, %v828_v47  ;;  %v447_v46 = vadd.f32 %v432_v56, %v1851_v30  ;;  %v519_v1 = vmul.f32 %v499_v61, %v481_v59 }
  0xe0   : > { %v1957_v8 = vsel %vm419_vm0, %v828_v47, %v830_v63  ;;  %v483_v9 = vmul.f32 %v1880_v57, %v459_v0  ;;  %v482_v10 = vmul.f32 %v1880_v57, %v455_v2  ;;  %v510_v13 = vrot.slane %v1855_v31, 1 }
  0xe1   : > { %v533_v12 = vrot.slane %v519_v1, 4  ;;  %v505_v24 = vsel %vm496_vm1, %v502_v5, %v504_v60  ;;  %v507_v25 = vsel %vm496_vm1, %v504_v60, %v506_v3  ;;  %v509_v40 = vsel %vm496_vm1, %v506_v3, %v508_v11 }
  0xe2   : > { %v521_v14 = vmul.f32 %v503_v28, %v483_v9  ;;  %v520_v18 = vmul.f32 %v501_v62, %v482_v10  ;;  %v463_v23 = vpop.permute.xlu1 %462  ;;  %v467_v61 = vpop.permute.xlu0 %466  ;;  %v592_v44 = vsub.s32 1, %v1826_v15  ;;  %v511_v48 = vsel %vm496_vm1, %v508_v11, %v510_v13 }
  0xe3   : > { %v554_v34 = vadd.f32 %v533_v12, %v1883_v58  ;;  %v484_v35 = vmul.f32 %v1880_v57, %v463_v23  ;;  %v485_v37 = vmul.f32 %v1880_v57, %v467_v61  ;;  %v602_v5 = vrot.slane %v1835_v20, 2 }
  0xe4   : > { %v536_v38 = vrot.slane %v521_v14, 4  ;;  %v534_v39 = vrot.slane %v520_v18, 4  ;;  %v603_v59 = vrot.slane %v1837_v21, 2  ;;  %v605_v28 = vrot.slane %v1828_v16, 2 }
  0xe5   : > { %v522_v45 = vmul.f32 %v505_v24, %v484_v35  ;;  %v523_v47 = vmul.f32 %v507_v25, %v485_v37  ;;  %v593_v1 = vrot.slane %v1833_v19, %v592_v44  ;;  %v607_v11 = vrot.slane %v1830_v17, 2 }
  0xe6   : > { %v535_v49 = vsel %vm419_vm0, %v533_v12, %v534_v39  ;;  %v537_v58 = vsel %vm419_vm0, %v534_v39, %v536_v38  ;;  %v471_v50 = vpop.permute.xlu1 %470  ;;  %v475_v33 = vpop.permute.xlu0 %474  ;;  %v606_v23 = vsel %vm601_vm2, %v603_v59, %v605_v28  ;;  %v609_v24 = vrot.slane %v1843_v26, 2 }
  0xe7   : > { %v555_v62 = vadd.f32 %v535_v49, %v1906_v29  ;;  %v556_v56 = vadd.f32 %v537_v58, %v1909_v32  ;;  %v538_v0 = vrot.slane %v522_v45, 4  ;;  %v540_v2 = vrot.slane %v523_v47, 4 }
  0xe8   : > { %v486_v60 = vmul.f32 %v1880_v57, %v471_v50  ;;  %v487_v3 = vmul.f32 %v1880_v57, %v475_v33  ;;  %v604_v57 = vsel %vm601_vm2, %v602_v5, %v603_v59  ;;  %v611_v61 = vrot.slane %v1845_v27, 2 }
  0xe9   : > { %v539_v9 = vsel %vm419_vm0, %v536_v38, %v538_v0  ;;  %v541_v10 = vsel %vm419_vm0, %v538_v0, %v540_v2  ;;  %v613_v0 = vrot.slane %v1851_v30, 2 }
  0xea   : > { %v1985_v12 = vadd.f32 %v539_v9, %v1901_v22  ;;  %v1987_v29 = vadd.f32 %v541_v10, %v445_v52  ;;  %v524_v32 = vmul.f32 %v509_v40, %v486_v60  ;;  %v1989_v13 = vmul.f32 %v511_v48, %v487_v3 }
  0xeb   : > { %v564_v14 = vpop.permute.xlu1 %563  ;;  %v568_v18 = vpop.permute.xlu0 %567  ;;  %v608_v40 = vsel %vm601_vm2, %v605_v28, %v607_v11  ;;  %v612_v49 = vsel %vm601_vm2, %v609_v24, %v611_v61  ;;  %v697_v28 = vsub.s32 2, %v1826_v15  ;;  %v610_v10 = vsel %vm601_vm2, %v607_v11, %v609_v24 }
  0xec   : > { %v542_v25 = vrot.slane %v524_v32, 4  ;;  %v544_v35 = vrot.slane %v1989_v13, 4  ;;  %v594_v22 = vmul.f32 %v593_v1, %v564_v14  ;;  %v595_v37 = vmul.f32 %v593_v1, %v568_v18 }
  0xed   : > { %v708_v14 = vrot.slane %v1837_v21, 3  ;;  %v707_v24 = vrot.slane %v1835_v20, 3 }
  0xee   : > { %v543_v52 = vsel %vm419_vm0, %v540_v2, %v542_v25  ;;  %v545_v38 = vsel %vm419_vm0, %v542_v25, %v544_v35  ;;  %v624_v39 = vmul.f32 %v604_v57, %v594_v22  ;;  %v625_v47 = vmul.f32 %v606_v23, %v595_v37 }
  0xef   : > { %v2002_v44 = vadd.f32 %v543_v52, %v1931_v53  ;;  %v2004_v45 = vadd.f32 %v545_v38, %v447_v46  ;;  %v572_v48 = vpop.permute.xlu1 %571  ;;  %v580_v5 = vpop.permute.xlu0 %579  ;;  %v615_v2 = vrot.slane %v1855_v31, 2  ;;  %v710_v25 = vrot.slane %v1828_v16, 3 }
  0xf0   : > { %v638_v58 = vrot.slane %v624_v39, 4  ;;  %v596_v50 = vmul.f32 %v593_v1, %v572_v48  ;;  %v598_v33 = vmul.f32 %v593_v1, %v580_v5  ;;  %v639_v59 = vrot.slane %v625_v47, 4 }
  0xf1   : > { %v2020_v37 = vrot.slane %v1833_v19, %v697_v28 }
  0xf2   : > { %v2010_v60 = vadd.f32 %v638_v58, %v554_v34  ;;  %v626_v53 = vmul.f32 %v608_v40, %v596_v50  ;;  %v628_v46 = vmul.f32 %v612_v49, %v598_v33  ;;  %v640_v3 = vsel %vm419_vm0, %v638_v58, %v639_v59 }
  0xf3   : > { %v576_v9 = vpop.permute.xlu1 %575  ;;  %v588_v32 = vpop.permute.xlu0 %587  ;;  %v2015_v57 = vadd.f32 %v640_v3, %v555_v62  ;;  %v616_v34 = vsel %vm601_vm2, %v613_v0, %v615_v2  ;;  %v614_v40 = vsel %vm601_vm2, %v611_v61, %v613_v0  ;;  %v711_v58 = vsel %vm706_vm3, %v708_v14, %v710_v25 }
  0xf4   : > { %v641_v18 = vrot.slane %v626_v53, 4  ;;  %v597_v23 = vmul.f32 %v593_v1, %v576_v9  ;;  %v600_v22 = vmul.f32 %v593_v1, %v588_v32  ;;  %v645_v38 = vrot.slane %v628_v46, 4 }
  0xf5   : > { %v714_v33 = vrot.slane %v1843_v26, 3  ;;  %v709_v53 = vsel %vm706_vm3, %v707_v24, %v708_v14  ;;  %v712_v46 = vrot.slane %v1830_v17, 3 }
  0xf6   : > { %v642_v52 = vsel %vm419_vm0, %v639_v59, %v641_v18  ;;  %v627_v11 = vmul.f32 %v610_v10, %v597_v23  ;;  %v630_v48 = vmul.f32 %v616_v34, %v600_v22  ;;  %v716_v59 = vrot.slane %v1845_v27, 3 }
  0xf7   : > { %v2024_v39 = vadd.f32 %v642_v52, %v556_v56  ;;  %v584_v62 = vpop.permute.xlu1 %583  ;;  %v720_v23 = vrot.slane %v1855_v31, 3  ;;  %v878_v52 = vsub.s32 4, %v1826_v15 }
  0xf8   : > { %v643_v47 = vrot.slane %v627_v11, 4  ;;  %v599_v5 = vmul.f32 %v593_v1, %v584_v62  ;;  %v673_v49 = vpop.permute.xlu0 %672  ;;  %v649_v3 = vrot.slane %v630_v48, 4  ;;  %v717_v14 = vsel %vm706_vm3, %v714_v33, %v716_v59 }
  0xf9   : > { %v700_v50 = vmul.f32 %v2020_v37, %v673_v49  ;;  %v2066_v43 = vrot.slane %v1833_v19, %v878_v52 }
  0xfa   : > { %v644_v2 = vsel %vm419_vm0, %v641_v18, %v643_v47  ;;  %v646_v56 = vsel %vm419_vm0, %v643_v47, %v645_v38  ;;  %v629_v28 = vmul.f32 %v614_v40, %v599_v5  ;;  %v718_v18 = vrot.slane %v1851_v30, 3 }
  0xfb   : > { %v2035_v61 = vadd.f32 %v644_v2, %v1985_v12  ;;  %v2038_v1 = vadd.f32 %v646_v56, %v1987_v29  ;;  %v730_v0 = vmul.f32 %v711_v58, %v700_v50  ;;  %v448_v47 = vadd.f32 %v431_v54, %v1855_v31 }
  0xfc   : > { %v647_v9 = vrot.slane %v629_v28, 4  ;;  %v669_v10 = vpop.permute.xlu1 %668  ;;  %v685_v32 = vpop.permute.xlu0 %684  ;;  %v721_v49 = vsel %vm706_vm3, %v718_v18, %v720_v23  ;;  %v891_v54 = vrot.slane %v1828_v16, 5  ;;  %v715_v23 = vsel %vm706_vm3, %v712_v46, %v714_v33 }
  0xfd   : > { %v699_v22 = vmul.f32 %v2020_v37, %v669_v10  ;;  %v703_v34 = vmul.f32 %v2020_v37, %v685_v32  ;;  %v744_v62 = vrot.slane %v730_v0, 4  ;;  %v561_v2 = vadd.f32 %v544_v35, %v448_v47 }
  0xfe   : > { %v648_v12 = vsel %vm419_vm0, %v645_v38, %v647_v9  ;;  %v650_v29 = vsel %vm419_vm0, %v647_v9, %v649_v3  ;;  %v713_v38 = vsel %vm706_vm3, %v710_v25, %v712_v46  ;;  %v719_v13 = vsel %vm706_vm3, %v716_v59, %v718_v18 }
  0xff   : > { %v2050_v11 = vadd.f32 %v648_v12, %v2002_v44  ;;  %v2053_v24 = vadd.f32 %v650_v29, %v2004_v45  ;;  %v729_v40 = vmul.f32 %v709_v53, %v699_v22  ;;  %v889_v45 = vrot.slane %v1837_v21, 5 }
 0x100   : > { %v677_v48 = vpop.permute.xlu1 %676  ;;  %v693_v5 = vpop.permute.xlu0 %692  ;;  %v733_v56 = vmul.f32 %v717_v14, %v703_v34  ;;  %v666_v9 = vadd.f32 %v649_v3, %v561_v2  ;;  %v895_v3 = vrot.slane %v1843_v26, 5  ;;  %v897_v47 = vrot.slane %v1845_v27, 5 }
 0x101   : > { %v743_v58 = vrot.slane %v729_v40, 4  ;;  %v701_v44 = vmul.f32 %v2020_v37, %v677_v48  ;;  %v705_v50 = vmul.f32 %v2020_v37, %v693_v5  ;;  %v892_v34 = vsel %vm887_vm4, %v889_v45, %v891_v54 }
 0x102   : > { %v750_v52 = vrot.slane %v733_v56, 4 }
 0x103   : > { %v745_v25 = vsel %vm419_vm0, %v743_v58, %v744_v62  ;;  %v764_v28 = vadd.f32 %v743_v58, %v2010_v60  ;;  %v731_v53 = vmul.f32 %v713_v38, %v701_v44  ;;  %v735_v0 = vmul.f32 %v721_v49, %v705_v50 }
 0x104   : > { %v765_v10 = vadd.f32 %v745_v25, %v2015_v57  ;;  %v681_v32 = vpop.permute.xlu1 %680  ;;  %v890_v25 = vsel %vm887_vm4, %v888_v51, %v889_v45 }
 0x105   : > { %v746_v35 = vrot.slane %v731_v53, 4  ;;  %v754_v22 = vrot.slane %v735_v0, 4  ;;  %v702_v14 = vmul.f32 %v2020_v37, %v681_v32  ;;  %v854_v12 = vpop.permute.xlu0 %853  ;;  %v840_v29 = vadd.f32 %v819_v6, %v764_v28 }
 0x106   : > { %v881_v60 = vmul.f32 %v2066_v43, %v854_v12  ;;  %v841_v57 = vadd.f32 %v1918_v41, %v765_v10  ;;  %v899_v6 = vrot.slane %v1851_v30, 5  ;;  %v893_v53 = vrot.slane %v1830_v17, 5 }
 0x107   : > { %v747_v33 = vsel %vm419_vm0, %v744_v62, %v746_v35  ;;  %v771_v59 = vadd.f32 %v754_v22, %v666_v9  ;;  %v732_v46 = vmul.f32 %v715_v23, %v702_v14  ;;  %v901_v62 = vrot.slane %v1855_v31, 5 }
 0x108   : > { %v766_v18 = vadd.f32 %v747_v33, %v2024_v39  ;;  %v689_v40 = vpop.permute.xlu1 %688  ;;  %v911_v49 = vmul.f32 %v892_v34, %v881_v60  ;;  %v894_v34 = vsel %vm887_vm4, %v891_v54, %v893_v53 }
 0x109   : > { %v748_v48 = vrot.slane %v732_v46, 4  ;;  %v704_v38 = vmul.f32 %v2020_v37, %v689_v40  ;;  %v866_v5 = vpop.permute.xlu0 %865  ;;  %v847_v41 = vadd.f32 %v830_v63, %v771_v59  ;;  %v898_v37 = vsel %vm887_vm4, %v895_v3, %v897_v47 }
 0x10a   : > { %v842_v58 = vadd.f32 %v1921_v42, %v766_v18  ;;  %v902_v42 = vsel %vm887_vm4, %v899_v6, %v901_v62  ;;  %v925_v0 = vrot.slane %v911_v49, 4  ;;  %v884_v45 = vmul.f32 %v2066_v43, %v866_v5 }
 0x10b   : > { %v749_v39 = vsel %vm419_vm0, %v746_v35, %v748_v48  ;;  %v751_v44 = vsel %vm419_vm0, %v748_v48, %v750_v52  ;;  %v734_v50 = vmul.f32 %v719_v13, %v704_v38  ;;  %v996_v5 = vrot.slane %v1828_v16, 6 }
 0x10c   : > { %v767_v2 = vadd.f32 %v749_v39, %v2035_v61  ;;  %v768_v56 = vadd.f32 %v751_v44, %v2038_v1  ;;  %v914_v46 = vmul.f32 %v898_v37, %v884_v45  ;;  %v1004_v44 = vrot.slane %v1851_v30, 6 }
 0x10d   : > { %v752_v55 = vrot.slane %v734_v50, 4  ;;  %v850_v63 = vpop.permute.xlu1 %849  ;;  %v874_v28 = vpop.permute.xlu0 %873  ;;  %v1002_v45 = vrot.slane %v1845_v27, 6 }
 0x10e   : > { %v880_v61 = vmul.f32 %v2066_v43, %v850_v63  ;;  %v886_v1 = vmul.f32 %v2066_v43, %v874_v28  ;;  %v843_v9 = vadd.f32 %v1912_v36, %v767_v2  ;;  %v844_v23 = vadd.f32 %v1948_v4, %v768_v56 }
 0x10f   : > { %v753_v10 = vsel %vm419_vm0, %v750_v52, %v752_v55  ;;  %v755_v32 = vsel %vm419_vm0, %v752_v55, %v754_v22  ;;  %v983_v36 = vsub.s32 5, %v1826_v15  ;;  %v900_v55 = vsel %vm887_vm4, %v897_v47, %v899_v6 }
 0x110   : > { %v769_v13 = vadd.f32 %v753_v10, %v2050_v11  ;;  %v770_v35 = vadd.f32 %v755_v32, %v2053_v24  ;;  %v910_v14 = vmul.f32 %v890_v25, %v880_v61  ;;  %v2112_v12 = vmul.f32 %v902_v42, %v886_v1 }
 0x111   : > { %v858_v60 = vpop.permute.xlu1 %857  ;;  %v994_v11 = vrot.slane %v1837_v21, 6  ;;  %v2127_v38 = vrot.slane %v1833_v19, %v983_v36 }
 0x112   : > { %v924_v33 = vrot.slane %v910_v14, 4  ;;  %v935_v52 = vrot.slane %v2112_v12, 4  ;;  %v882_v22 = vmul.f32 %v2066_v43, %v858_v60  ;;  %v959_v59 = vpop.permute.xlu0 %958  ;;  %v845_v4 = vadd.f32 %v1951_v7, %v769_v13 }
 0x113   : > { %v846_v24 = vadd.f32 %v1957_v8, %v770_v35  ;;  %v896_v7 = vsel %vm887_vm4, %v893_v53, %v895_v3  ;;  %v986_v50 = vmul.f32 %v2127_v38, %v959_v59  ;;  %v997_v37 = vsel %vm992_vm5, %v994_v11, %v996_v5 }
 0x114   : > { %v926_v18 = vsel %vm419_vm0, %v924_v33, %v925_v0  ;;  %v2122_v40 = vadd.f32 %v924_v33, %v840_v29  ;;  %v952_v54 = vadd.f32 %v935_v52, %v847_v41  ;;  %v912_v51 = vmul.f32 %v894_v34, %v882_v22 }
 0x115   : > { %v2124_v48 = vadd.f32 %v926_v18, %v841_v57  ;;  %v862_v62 = vpop.permute.xlu1 %861  ;;  %v1006_v29 = vrot.slane %v1855_v31, 6  ;;  %v931_v41 = vrot.slane %v914_v46, 4  ;;  %v998_v12 = vrot.slane %v1830_v17, 6 }
 0x116   : > { %v927_v49 = vrot.slane %v912_v51, 4  ;;  %v883_v39 = vmul.f32 %v2066_v43, %v862_v62  ;;  %v971_v8 = vpop.permute.xlu0 %970 }
 0x117   : > { %v1007_v42 = vsel %vm992_vm5, %v1004_v44, %v1006_v29  ;;  %v989_v33 = vmul.f32 %v2127_v38, %v971_v8  ;;  %v1109_v29 = vrot.slane %v1851_v30, 7 }
 0x118   : > { %v928_v57 = vsel %vm419_vm0, %v925_v0, %v927_v49  ;;  %v913_v2 = vmul.f32 %v896_v7, %v883_v39  ;;  %v1016_v0 = vmul.f32 %v997_v37, %v986_v50  ;;  %v1099_v50 = vrot.slane %v1837_v21, 7 }
 0x119   : > { %v2136_v56 = vadd.f32 %v928_v57, %v842_v58  ;;  %v870_v3 = vpop.permute.xlu1 %869  ;;  %v993_v58 = vrot.slane %v1835_v20, 6 }
 0x11a   : > { %v929_v63 = vrot.slane %v913_v2, 4  ;;  %v885_v25 = vmul.f32 %v2066_v43, %v870_v3  ;;  %v979_v28 = vpop.permute.xlu0 %978  ;;  %v1000_v43 = vrot.slane %v1843_v26, 6  ;;  %v1030_v36 = vrot.slane %v1016_v0, 4 }
 0x11b   : > { %v991_v53 = vmul.f32 %v2127_v38, %v979_v28  ;;  %v995_v14 = vsel %vm992_vm5, %v993_v58, %v994_v11 }
 0x11c   : > { %v930_v61 = vsel %vm419_vm0, %v927_v49, %v929_v63  ;;  %v932_v1 = vsel %vm419_vm0, %v929_v63, %v931_v41  ;;  %v915_v10 = vmul.f32 %v900_v55, %v885_v25  ;;  %v1003_v62 = vsel %vm992_vm5, %v1000_v43, %v1002_v45 }
 0x11d   : > { %v2152_v32 = vadd.f32 %v930_v61, %v843_v9  ;;  %v2154_v47 = vadd.f32 %v932_v1, %v844_v23  ;;  %v2157_v6 = vmul.f32 %v1007_v42, %v991_v53  ;;  %v1088_v9 = vsub.s32 6, %v1826_v15 }
 0x11e   : > { %v933_v13 = vrot.slane %v915_v10, 4  ;;  %v955_v35 = vpop.permute.xlu1 %954  ;;  %v999_v49 = vsel %vm992_vm5, %v996_v5, %v998_v12  ;;  %v1001_v37 = vsel %vm992_vm5, %v998_v12, %v1000_v43  ;;  %v1005_v53 = vsel %vm992_vm5, %v1002_v45, %v1004_v44 }
 0x11f   : > { %v1040_v60 = vrot.slane %v2157_v6, 4  ;;  %v985_v34 = vmul.f32 %v2127_v38, %v955_v35  ;;  %v1064_v23 = vpop.permute.xlu0 %1063  ;;  %v1098_v10 = vrot.slane %v1835_v20, 7 }
 0x120   : > { %v934_v22 = vsel %vm419_vm0, %v931_v41, %v933_v13  ;;  %v936_v59 = vsel %vm419_vm0, %v933_v13, %v935_v52  ;;  %v1111_v52 = vrot.slane %v1855_v31, 7  ;;  %v1101_v31 = vrot.slane %v1828_v16, 7 }
 0x121   : > { %v950_v46 = vadd.f32 %v934_v22, %v845_v4  ;;  %v951_v18 = vadd.f32 %v936_v59, %v846_v24  ;;  %v1057_v11 = vadd.f32 %v1040_v60, %v952_v54  ;;  %v1015_v51 = vmul.f32 %v995_v14, %v985_v34 }
 0x122   : > { %v963_v7 = vpop.permute.xlu1 %962  ;;  %v2176_v4 = vrot.slane %v1833_v19, %v1088_v9  ;;  %v1019_v24 = vmul.f32 %v1003_v62, %v989_v33  ;;  %v1102_v0 = vsel %vm1097_vm6, %v1099_v50, %v1101_v31  ;;  %v1107_v33 = vrot.slane %v1845_v27, 7 }
 0x123   : > { %v1029_v15 = vrot.slane %v1015_v51, 4  ;;  %v987_v39 = vmul.f32 %v2127_v38, %v963_v7  ;;  %v1076_v8 = vpop.permute.xlu0 %1075 }
 0x124   : > { %v1036_v25 = vrot.slane %v1019_v24, 4  ;;  %v1091_v28 = vmul.f32 %v2176_v4, %v1064_v23  ;;  %v1100_v23 = vsel %vm1097_vm6, %v1098_v10, %v1099_v50  ;;  %v1094_v7 = vmul.f32 %v2176_v4, %v1076_v8 }
 0x125   : > { %v1031_v54 = vsel %vm419_vm0, %v1029_v15, %v1030_v36  ;;  %v1050_v41 = vadd.f32 %v1029_v15, %v2122_v40  ;;  %v1017_v5 = vmul.f32 %v999_v49, %v987_v39  ;;  %v1112_v40 = vsel %vm1097_vm6, %v1109_v29, %v1111_v52 }
 0x126   : > { %v1051_v57 = vadd.f32 %v1031_v54, %v2124_v48  ;;  %v967_v2 = vpop.permute.xlu1 %966  ;;  %v1121_v14 = vmul.f32 %v1102_v0, %v1091_v28 }
 0x127   : > { %v1032_v19 = vrot.slane %v1017_v5, 4  ;;  %v988_v3 = vmul.f32 %v2127_v38, %v967_v2  ;;  %v1084_v55 = vpop.permute.xlu0 %1083 }
 0x128   : > { %v1096_v63 = vmul.f32 %v2176_v4, %v1084_v55  ;;  %v1135_v22 = vrot.slane %v1121_v14, 4 }
 0x129   : > { %v1033_v48 = vsel %vm419_vm0, %v1030_v36, %v1032_v19  ;;  %v1018_v21 = vmul.f32 %v1001_v37, %v988_v3  ;;  %v1105_v36 = vrot.slane %v1843_v26, 7 }
 0x12a   : > { %v1052_v16 = vadd.f32 %v1033_v48, %v2136_v56  ;;  %v2195_v42 = vmul.f32 %v1112_v40, %v1096_v63  ;;  %v975_v58 = vpop.permute.xlu1 %974 }
 0x12b   : > { %v1034_v61 = vrot.slane %v1018_v21, 4  ;;  %v990_v1 = vmul.f32 %v2127_v38, %v975_v58  ;;  %v1103_v38 = vrot.slane %v1830_v17, 7  ;;  %v1108_v49 = vsel %vm1097_vm6, %v1105_v36, %v1107_v33 }
 0x12c   : > { %v1145_v43 = vrot.slane %v2195_v42, 4  ;;  %v1124_v52 = vmul.f32 %v1108_v49, %v1094_v7 }
 0x12d   : > { %v1035_v13 = vsel %vm419_vm0, %v1032_v19, %v1034_v61  ;;  %v1037_v56 = vsel %vm419_vm0, %v1034_v61, %v1036_v25  ;;  %v1020_v35 = vmul.f32 %v1005_v53, %v990_v1  ;;  %v1104_v62 = vsel %vm1097_vm6, %v1101_v31, %v1103_v38 }
 0x12e   : > { %v1053_v12 = vadd.f32 %v1035_v13, %v2152_v32  ;;  %v1054_v34 = vadd.f32 %v1037_v56, %v2154_v47  ;;  %v1162_v44 = vadd.f32 %v1145_v43, %v1057_v11  ;;  %v1141_v2 = vrot.slane %v1124_v52, 4 }
 0x12f   : > { %v1038_v45 = vrot.slane %v1020_v35, 4  ;;  %v1060_v9 = vpop.permute.xlu1 %1059 }
 0x130   : > { %1170 = vst [vmem:[%s2210_s5 + $0x34] sm:$0xf] %v1162_v44  ;;  %v1090_v20 = vmul.f32 %v2176_v4, %v1060_v9 }
 0x131   : > { %v1039_v32 = vsel %vm419_vm0, %v1036_v25, %v1038_v45  ;;  %v1041_v47 = vsel %vm419_vm0, %v1038_v45, %v1040_v60 }
 0x132   : > { %v1055_v59 = vadd.f32 %v1039_v32, %v950_v46  ;;  %v1056_v17 = vadd.f32 %v1041_v47, %v951_v18  ;;  %v1120_v11 = vmul.f32 %v1100_v23, %v1090_v20  ;;  %v1106_v18 = vsel %vm1097_vm6, %v1103_v38, %v1105_v36 }
 0x133   : > { %v1068_v51 = vpop.permute.xlu1 %1067 }
 0x134   : > { %v1134_v26 = vrot.slane %v1120_v11, 4  ;;  %v1092_v27 = vmul.f32 %v2176_v4, %v1068_v51 }
 0x136   : > { %v1136_v6 = vsel %vm419_vm0, %v1134_v26, %v1135_v22  ;;  %v1155_v15 = vadd.f32 %v1134_v26, %v1050_v41  ;;  %v1122_v60 = vmul.f32 %v1104_v62, %v1092_v27 }
 0x137   : > { %v1156_v39 = vadd.f32 %v1136_v6, %v1051_v57  ;;  %v1072_v46 = vpop.permute.xlu1 %1071  ;;  %v1110_v57 = vsel %vm1097_vm6, %v1107_v33, %v1109_v29 }
 0x138   : > { %1163 = vst [vmem:[%s2210_s5 - $0x4] sm:$0xf0] %v1155_v15  ;;  %v1137_v24 = vrot.slane %v1122_v60, 4  ;;  %v1093_v54 = vmul.f32 %v2176_v4, %v1072_v46 }
 0x139   : > { %1164 = vst [vmem:[%s2210_s5 + $0x4] sm:$0xff] %v1156_v39 }
 0x13a   : > { %v1138_v8 = vsel %vm419_vm0, %v1135_v22, %v1137_v24  ;;  %v1123_v5 = vmul.f32 %v1106_v18, %v1093_v54 }
 0x13b   : > { %v1157_v50 = vadd.f32 %v1138_v8, %v1052_v16  ;;  %v1080_v41 = vpop.permute.xlu1 %1079 }
 0x13c   : > { %v1139_v37 = vrot.slane %v1123_v5, 4  ;;  %v1095_v31 = vmul.f32 %v2176_v4, %v1080_v41 }
 0x13d   : > { %1165 = vst [vmem:[%s2210_s5 + $0xc] sm:$0xff] %v1157_v50 }
 0x13e   : > { %v1140_v19 = vsel %vm419_vm0, %v1137_v24, %v1139_v37  ;;  %v1142_v3 = vsel %vm419_vm0, %v1139_v37, %v1141_v2  ;;  %v1125_v55 = vmul.f32 %v1110_v57, %v1095_v31 }
 0x13f   : > { %v1158_v40 = vadd.f32 %v1140_v19, %v1053_v12  ;;  %v1159_v63 = vadd.f32 %v1142_v3, %v1054_v34 }
 0x140   : > { %v1143_v30 = vrot.slane %v1125_v55, 4 }
 0x141   : > { %1166 = vst [vmem:[%s2210_s5 + $0x14] sm:$0xff] %v1158_v40  ;;  %1167 = vst [vmem:[%s2210_s5 + $0x1c] sm:$0xff] %v1159_v63 }
 0x142   : > { %v1144_v29 = vsel %vm419_vm0, %v1141_v2, %v1143_v30  ;;  %v1146_v4 = vsel %vm419_vm0, %v1143_v30, %v1145_v43 }
 0x143   : > { %v1160_v25 = vadd.f32 %v1144_v29, %v1055_v59  ;;  %v1161_v48 = vadd.f32 %v1146_v4, %v1056_v17 }
 0x145   : > { %1168 = vst [vmem:[%s2210_s5 + $0x24] sm:$0xff] %v1160_v25  ;;  %1169 = vst [vmem:[%s2210_s5 + $0x2c] sm:$0xff] %v1161_v48 }
 0x146   : > { %1516 = shalt.err (!%p1513_p6)
}
 0x147   : > { %s1517_s12 = scalar_lea.hbm %s2248_s21, 896  ;;  %s1521_s24 = scalar_lea.hbm %s2313_s4, 1792 }
 0x148   : > { %p1518_p10 = scmp.ne.s32.totalorder %s2248_s21, %s1517_s12  ;;  %p1522_p11 = scmp.lt.s32.totalorder %s2248_s21, %s2313_s4 }
 0x149   : > { %p1523_p1 = scmp.lt.s32.totalorder %s1521_s24, %s1517_s12 }
 0x14a   : > { %p1519_p13 = pnand %p1518_p10, %p2331_p2 }
 0x14b   : > { %p1524_p0 = por %p1523_p1, %p1522_p11 }
 0x14c   : > { %p1520_p3 = pneg %p1519_p13 }
 0x14e   : > { %p1525_p5 = pnand %p1524_p0, %p1520_p3 }
 0x150   : > { %1528 = shalt.err (!%p1525_p5)
}
 0x151   : > { %s1623_s3 = smov 128   ;;  %s1624_s5 = smov 8  }
 0x152   : > { %1334 = dma.vmem_to_hbm [thread:$0]  (%p2331_p2), %s2243_s6, 896, %s2248_s21, %s2254_s15, %s1623_s3, %s1623_s3, %s1624_s5  }
 0x153 PF: > { %s2332_s11 = sld [smem:[#allocation12_spill]] }
 0x154   : > { %s2333_s10 = sld [smem:[#allocation13_spill]] }
 0x159   : > { %s1201_s7 = sand.u32 1, %s2332_s11  }
 0x15a   : > { %p2334_p7 = scmp.ne.s32.totalorder %s2333_s10, 0  ;;  %s1202_s29 = scalar_lea.sflag [#allocation5], %s1201_s7 }
 0x15c   : > { %p1345_p8 = pnand %p1315_p12, %p2334_p7 }
 0x15e   : > { %p1346_p9 = pneg %p1345_p8 }
 0x160   : > { %1574 = dma.done.wait (%p1346_p9), %s1202_s29, 896  }
 0x161   : > { %1576 = vsyncadd (%p1346_p9), %s1202_s29, 4294966400  ;;  %s21_s23 = sadd.s32 1, %s1611_s23   ;;  %s2335_s28 = sld [smem:[#allocation14_spill]] }
 0x162   : > { %p18_p4 = scmp.ge.s32.totalorder %s21_s23, 4   ;;  %s2336_s15 = smov %s1583_s16 }
 0x163   : > { %s2337_s16 = smov %s1587_s17  ;;  %s2338_s17 = smov %s1749_s9 }
 0x164   : > { %s2339_s18 = smov %s1595_s19  ;;  %s2340_s19 = smov %s1599_s20 }
 0x165   : > { %s2341_s20 = smov %s1746_s8  ;;  %s2342_s21 = smov %s1607_s22 }
 0x166   :  { %20 = sbr.rel (!%p18_p4) target bundleno = 11 (0xb), region = 92 }
 0x167   : > { %s2343_s22 = smov %s2335_s28 }
 0x16b   :  { %1207 = vsyncpa [#allocation4], 1 }
 0x16c   :  { %1209 = vsyncpa [#allocation4 + $0x1], 1 }
 0x16d   :  { %1210 = vsyncpa [#allocation7], 1 }
 0x16e   :  { %1211 = vsyncpa [#allocation5], 1 }
 0x16f   :  { %1213 = vsyncpa [#allocation5 + $0x1], 1 }

</bundles_post_ra>
